<compile_context>
chip_gen: v7x
topology: tpu7x:2x2x1
jax: 0.10.0
libtpu: 0.0.40
codegen_flags: <defaults>
</compile_context>

<pallas_src>
import jax
import jax.numpy as jnp
from jax.experimental import pallas as pl
from jax.experimental.pallas import tpu as pltpu

LANES = 128  # one vreg row of lanes; loss_num is tiny so a single lane-row suffices


def _multi_loss_kernel(packed_ref, out_ref, grads_ref):
    """packed_ref: (1, 2*LANES) f32 in VMEM.
         lanes [0, LANES)        = losses   (zero past n_active)
         lanes [LANES, 2*LANES)  = log_vars (pre-masked: zero past n_active)
       out_ref:   (1, 1) f32 scalar in SMEM               -> forward loss
       grads_ref: (1, 2*LANES) f32 in VMEM                -> analytic partials:
         lanes [0, LANES)        = d loss / d loss_i      = exp(-lv_i)
         lanes [LANES, 2*LANES)  = d loss / d log_vars_i  = 1 - exp(-lv_i) * loss_i
       Padded lanes (lv=0, ls=0) contribute exp(0)*0 + 0 = 0 to the forward sum; their
       (spurious) partials are discarded by the wrapper via static slicing to n_active.
    """
    packed = packed_ref[...]                 # single (1, 2*LANES) load
    ls = packed[:, 0:LANES]                  # (1, LANES) losses, lane-aligned view
    lv = packed[:, LANES:2 * LANES]          # (1, LANES) log_vars, lane-aligned view
    prec = jnp.exp(-lv)                      # one EUP exp
    out_ref[0, 0] = jnp.sum(prec * ls + lv)  # forward scalar
    grads_ref[:, 0:LANES] = prec             # d/dloss
    grads_ref[:, LANES:2 * LANES] = 1.0 - prec * ls  # d/dlog_vars


def _kernel_call(losses, lv_act):
    """losses, lv_act: (n_active,) f32.  Returns (scalar loss, d_losses, d_log_vars_active)."""
    n_active = losses.shape[0]
    # ONE lane-padded (1, 2*LANES) slab, static pad widths (fuses into the operand under jit).
    row = jnp.concatenate([
        jnp.pad(losses, (0, LANES - n_active)),
        jnp.pad(lv_act, (0, LANES - n_active)),
    ])[None, :]                                                   # (1, 2*LANES)

    loss, grads = pl.pallas_call(
        _multi_loss_kernel,
        out_shape=(jax.ShapeDtypeStruct((1, 1), jnp.float32),
                   jax.ShapeDtypeStruct((1, 2 * LANES), jnp.float32)),
        in_specs=[pl.BlockSpec(memory_space=pltpu.VMEM)],
        out_specs=(pl.BlockSpec(memory_space=pltpu.SMEM),
                   pl.BlockSpec(memory_space=pltpu.VMEM)),
        compiler_params=pltpu.CompilerParams(allow_input_fusion=[True]),
        cost_estimate=pl.CostEstimate(
            flops=4 * LANES,                 # mul + add + lane reduce + grad mul
            transcendentals=LANES,           # one exp per lane
            bytes_accessed=4 * (2 * LANES) * 2 + 4,
        ),
    )(row)

    d_losses = grads[0, 0:n_active]                   # exp(-lv_i)
    d_lv = grads[0, LANES:LANES + n_active]           # 1 - exp(-lv_i)*loss_i  (active lanes only)
    return loss[0, 0], d_losses, d_lv


@jax.custom_vjp
def _weighted_loss(losses, lv_act):
    loss, _, _ = _kernel_call(losses, lv_act)
    return loss


def _weighted_loss_fwd(losses, lv_act):
    loss, d_losses, d_lv = _kernel_call(losses, lv_act)
    return loss, (d_losses, d_lv)


def _weighted_loss_bwd(res, g):
    d_losses, d_lv = res
    return (g * d_losses, g * d_lv)


_weighted_loss.defvjp(_weighted_loss_fwd, _weighted_loss_bwd)


def custom_multi_loss(loss_list, log_vars):
    """JAX/Pallas equivalent of CustomMultiLossLayer.forward (differentiable w.r.t. log_vars
    and each loss in loss_list).

    loss_list: sequence of scalar losses
    log_vars:  (loss_num,) f32 parameter vector (nn.Parameter(torch.zeros(loss_num)))
    """
    loss_num = log_vars.shape[0]
    n_active = len(loss_list)
    assert n_active <= loss_num
    assert loss_num <= LANES

    losses = jnp.stack([jnp.asarray(l, jnp.float32) for l in loss_list])  # (n_active,)
    lv_act = log_vars[:n_active].astype(jnp.float32)
    # The slice above is outside the custom_vjp, so JAX's AD automatically routes zero
    # gradient to log_vars[i >= n_active], matching PyTorch.
    return _weighted_loss(losses, lv_act)


if __name__ == "__main__":
    loss_num = 6        # module capacity
    n_losses = 4        # len(loss_list) <= loss_num

    key = jax.random.PRNGKey(0)
    k_loss, k_lv = jax.random.split(key)
    loss_vals = jax.random.uniform(k_loss, (n_losses,), jnp.float32, minval=0.1, maxval=2.0)
    # Non-trivial log_vars exercise the exp path; module init (zeros) is a special case.
    log_vars = jax.random.normal(k_lv, (loss_num,), jnp.float32) * 0.3

    def pallas_loss_fn(loss_vec, lv):
        return custom_multi_loss([loss_vec[i] for i in range(n_losses)], lv)

    def ref_loss_fn(loss_vec, lv):
        precision = jnp.exp(-lv)
        loss = jnp.asarray(0.0, jnp.float32)
        for i in range(n_losses):
            loss = loss + precision[i] * loss_vec[i] + lv[i]
        return loss

    # Forward
    fwd = jax.jit(pallas_loss_fn)
    result = jax.block_until_ready(fwd(loss_vals, log_vars))
    ref = ref_loss_fn(loss_vals, log_vars)
    assert jnp.allclose(result, ref, rtol=1e-6, atol=1e-6), (result, ref)

    # Backward (analytic custom VJP, same single kernel launch for the forward residuals)
    val_grad = jax.jit(jax.value_and_grad(pallas_loss_fn, argnums=(0, 1)))
    (val, (g_loss, g_lv)) = jax.block_until_ready(val_grad(loss_vals, log_vars))
    ref_val, (rg_loss, rg_lv) = jax.value_and_grad(ref_loss_fn, argnums=(0, 1))(loss_vals, log_vars)
    assert jnp.allclose(val, ref_val, rtol=1e-6, atol=1e-6), (val, ref_val)
    assert jnp.allclose(g_loss, rg_loss, rtol=1e-5, atol=1e-6), (g_loss, rg_loss)
    assert jnp.allclose(g_lv, rg_lv, rtol=1e-5, atol=1e-6), (g_lv, rg_lv)

    print("KERNEL_OK")
</pallas_src>

<mosaic_0001>
module attributes {stable_mosaic.version = 11 : i64} {
  func.func @_multi_loss_kernel(%arg0: memref<1x256xf32, #tpu.memory_space<vmem>>, %arg1: memref<1x1xf32, #tpu.memory_space<smem>>, %arg2: memref<1x256xf32, #tpu.memory_space<vmem>>) attributes {dimension_semantics = [], scalar_prefetch = 0 : i64, scratch_operands = 0 : i64, tpu.core_type = #tpu.core_type<tc>} {
    %c0 = arith.constant 0 : index
    %c0_0 = arith.constant 0 : index
    %0 = vector.load %arg0[%c0, %c0_0] : memref<1x256xf32, #tpu.memory_space<vmem>>, vector<1x256xf32>
    %1 = vector.extract_strided_slice %0 {offsets = [0, 0], sizes = [1, 128], strides = [1, 1]} : vector<1x256xf32> to vector<1x128xf32>
    %2 = vector.extract_strided_slice %0 {offsets = [0, 128], sizes = [1, 128], strides = [1, 1]} : vector<1x256xf32> to vector<1x128xf32>
    %cst = arith.constant 0.000000e+00 : f32
    %3 = vector.broadcast %cst : f32 to vector<1x128xf32>
    %4 = arith.subf %3, %2 : vector<1x128xf32>
    %5 = math.exp %4 : vector<1x128xf32>
    %6 = arith.mulf %5, %1 : vector<1x128xf32>
    %7 = arith.addf %6, %2 : vector<1x128xf32>
    %8 = vector.shape_cast %7 : vector<1x128xf32> to vector<1x1x128xf32>
    %cst_1 = arith.constant dense<0.000000e+00> : vector<1xf32>
    %9 = vector.multi_reduction <add>, %8, %cst_1 [1, 2] : vector<1x1x128xf32> to vector<1xf32>
    %10 = vector.shape_cast %9 : vector<1xf32> to vector<1x1x1xf32>
    %11 = vector.extract %10[0, 0, 0] : f32 from vector<1x1x1xf32>
    %c0_2 = arith.constant 0 : index
    %c0_3 = arith.constant 0 : index
    %12 = memref.load %arg1[%c0_2, %c0_3] : memref<1x1xf32, #tpu.memory_space<smem>>
    memref.store %11, %arg1[%c0_2, %c0_3] : memref<1x1xf32, #tpu.memory_space<smem>>
    %c0_4 = arith.constant 0 : index
    %c0_5 = arith.constant 0 : index
    %13 = vector.load %arg2[%c0_4, %c0_5] : memref<1x256xf32, #tpu.memory_space<vmem>>, vector<1x128xf32>
    tpu.vector_store %arg2[%c0_4, %c0_5], %5 {strides = array<i32>} : memref<1x256xf32, #tpu.memory_space<vmem>>, vector<1x128xf32>,
    %14 = arith.mulf %5, %1 : vector<1x128xf32>
    %cst_6 = arith.constant 1.000000e+00 : f32
    %15 = vector.broadcast %cst_6 : f32 to vector<1x128xf32>
    %16 = arith.subf %15, %14 : vector<1x128xf32>
    %c0_7 = arith.constant 0 : index
    %c128 = arith.constant 128 : index
    %17 = vector.load %arg2[%c0_7, %c128] : memref<1x256xf32, #tpu.memory_space<vmem>>, vector<1x128xf32>
    tpu.vector_store %arg2[%c0_7, %c128], %16 {strides = array<i32>} : memref<1x256xf32, #tpu.memory_space<vmem>>, vector<1x128xf32>,
    return
  }
}

</mosaic_0001>

<bundles_post_ra>
// kernel: pallas_loss_fn.1
= control target key start
LH: loop header
LB: loop body
LE: loop exit
PB: predicated region body
PF: predicated region fallthrough
CT: control target
= control target key end

     0   :  { %8 = vsyncpa [#allocation4], 0  ;;  %s154_s0 = inlined_call_operand.vmem [shape: f32[1,256], index: 0, kind: input, shape index: {}]   ;;  %s155_s1 = inlined_call_operand.hbm [shape: f32[1,1], index: 1, kind: output, shape index: {0}]   ;;  %s156_s2 = inlined_call_operand.hbm [shape: f32[1,256], index: 2, kind: output, shape index: {1}]  }
   0x1   :  { %v12_v0 = vld [vmem:[%s154_s0] sm:$0x3] }
   0x2   :  { %9 = vsyncpa [#allocation3], 0  ;;  %v14_v1 = vrot.slane %v12_v0, 1  ;;  %vm21_vm0 = vcmask 1040384   ;;  %v34_v8 = vlaneseq  ;;  %s110_s11 = smov [#allocation5]  }
   0x3   :  { %s55_s12 = sshll.u32 %s110_s11, 4  ;;  %s56_s12 = int_to_ptr.vmem [resolvable:$true] %s55_s12 }
   0x4   :  { %v16_v2 = vsub.f32 0.0, %v14_v1  ;;  %vm36_vm1 = vcmp.lt.s32.totalorder %v34_v8, 128  ;;  %s74_s0 = scalar_lea.vmem %s56_s12, 32  ;;  %p79_p1 = scmp.lt.s32.totalorder %s56_s12, %s56_s12 }
   0x5   :  { %p75_p0 = scmp.ne.s32.totalorder %s56_s12, %s74_s0  ;;  %p80_p2 = scmp.lt.s32.totalorder %s74_s0, %s74_s0 }
   0x6   :  { %v17_v3 = vmul.f32 1.442695, %v16_v2 }
   0x7   :  { %p81_p3 = por %p80_p2, %p79_p1 }
   0x8   :  { %72 = vpow2.f32 %v17_v3 }
   0x9   :  { %p82_p4 = pnand %p81_p3, %p75_p0 }
  0x12   :  { %v73_v4 = vpop.eup %72 }
  0x13   :  { %v19_v5 = vmul.f32 %v73_v4, %v12_v0  ;;  %38 = vst.msk [vmem:[#allocation5] sm:$0x1] %vm36_vm1, %v73_v4 }
  0x15   :  { %v20_v6 = vadd.f32 %v19_v5, %v14_v1  ;;  %v39_v9 = vsub.f32 1.0, %v19_v5 }
  0x17   :  { %v22_v7 = vsel %vm21_vm0, %v20_v6, 0.0  ;;  %40 = vst.msk [vmem:[#allocation5 + $0x1] sm:$0x1] %vm36_vm1, %v39_v9 }
  0x18   :  { %23 = vadd.xlane.f32.xlu0 %v22_v7 }
  0x19   :  { %85 = shalt.err (!%p82_p4)
}
  0x1a   :  { %s86_s15 = scalar_lea.hbm %s156_s2, 32 }
  0x1b   :  { %p87_p5 = scmp.ne.s32.totalorder %s156_s2, %s86_s15  ;;  %p90_p6 = scmp.lt.u32.totalorder %s86_s15, %s156_s2 }
  0x1d   :  { %p92_p7 = pnand %p90_p6, %p87_p5 }
  0x1f   :  { %95 = shalt.err (!%p92_p7)
}
  0x20   :  { %58 = dma.vmem_to_hbm [thread:$0]  %s56_s12, 32, %s156_s2, [#allocation3]  }
  0x21   :  { %s96_s25 = scalar_lea.hbm %s155_s1, 16 }
  0x22   :  { %p97_p8 = scmp.ne.s32.totalorder %s155_s1, %s96_s25  ;;  %p100_p9 = scmp.lt.u32.totalorder %s96_s25, %s155_s1 }
  0x24   :  { %p102_p10 = pnand %p100_p9, %p97_p8 }
  0xa5   :  { %v24_v10 = vpop.xlane.xlu0 %23 }
  0xa6   :  { %v25_v11 = vrot.slane %v24_v10, 4 }
  0xa8   :  { %v26_v12 = vadd.f32 %v25_v11, %v24_v10 }
  0xaa   :  { %v27_v13 = vrot.slane %v26_v12, 2 }
  0xac   :  { %v28_v14 = vadd.f32 %v27_v13, %v26_v12 }
  0xae   :  { %v29_v15 = vrot.slane %v28_v14, 1 }
  0xb0   :  { %v30_v16 = vadd.f32 %v29_v15, %v28_v14 }
  0xb2   :  { %68 = vpush %v30_v16 }
  0xe3   :  { %s69_s22 = spop %68 }
  0xe4   :  { %33 = sst [smem:[#allocation2]] %s69_s22 }
  0xe5   :  { %105 = shalt.err (!%p102_p10)
}
  0xe6   :  { %s111_s29 = smov [#allocation2]  }
  0xe7   :  { %48 = dma.smem_to_hbm %s111_s29, 16, %s155_s1, [#allocation4]  }
  0xe8   :  { %106 = dma.done.wait [#allocation4], 16  }
  0xe9   :  { %107 = vsyncadd [#allocation4], 4294967280 }
  0xea   :  { %108 = dma.done.wait [#allocation3], 32  }
  0xeb   :  { %109 = vsyncadd [#allocation3], 4294967264 }
  0xec   :  { %65 = sfence }
  0xed   :  { %66 = vsyncpa [#allocation3], 1 }
  0xee   :  { %67 = vsyncpa [#allocation4], 1 }

</bundles_post_ra>
